<compile_context>
chip_gen: v7x
topology: tpu7x:2x2x1
jax: 0.10.0
libtpu: 0.0.40
codegen_flags: <defaults>
</compile_context>

<pallas_src>
import math
import jax
import jax.numpy as jnp
from jax.experimental import pallas as pl
from jax.experimental.pallas import tpu as pltpu

_INV_SQRT2 = 1.0 / math.sqrt(2.0)
_MIB = 1024 * 1024


def _round_up(x, m):
    return ((x + m - 1) // m) * m


def _vmem_capacity_bytes():
    """Physical VMEM per core; conservative fallback (v7x = 64 MiB) if unknown."""
    try:
        info = pltpu.get_tpu_info()
        for name in ("vmem_capacity_bytes", "vmem_size_bytes"):
            cap = getattr(info, name, None)
            if cap:
                return int(cap)
    except Exception:
        pass
    return 64 * _MIB


def mlp_kernel(x_ref, w1_ref, b1_ref, w2_ref, b2_ref, o_ref, *maybe_acc):
    # x_ref: (tm, INp) cdtype, w1_ref: (INp, th) cdtype, b1_ref: (1, th) f32,
    # w2_ref: (th, OUTp) cdtype, b2_ref: (1, OUTp) f32, o_ref: (tm, OUTp) out dtype,
    # maybe_acc: optional (tm, OUTp) f32 scratch (only when o_ref is not f32 —
    # for f32 outputs we accumulate directly into the resident output block).
    acc_ref = maybe_acc[0] if maybe_acc else o_ref
    j = pl.program_id(1)

    @pl.when(j == 0)
    def _init():
        acc_ref[...] = jnp.zeros_like(acc_ref)

    # fc1 for this hidden tile; bf16 (or f32) MXU inputs, f32 accumulation.
    h = jnp.dot(x_ref[...], w1_ref[...], preferred_element_type=jnp.float32)
    h = h + b1_ref[...]
    # Exact (erf-based) GELU in f32 — matches nn.GELU() default.
    h = 0.5 * h * (1.0 + jax.lax.erf(h * _INV_SQRT2))
    # dropout(p=0.0) == identity
    # TODO(synk): for p > 0, seed pltpu.prng_seed + pltpu.prng_random_bits and mask/scale h.

    # fc2 partial product for this hidden tile, accumulated in f32.
    acc_ref[...] += jnp.dot(h.astype(w2_ref.dtype), w2_ref[...],
                            preferred_element_type=jnp.float32)

    @pl.when(j == pl.num_programs(1) - 1)
    def _finalize():
        o_ref[...] = (acc_ref[...] + b2_ref[...]).astype(o_ref.dtype)


def mlp_pallas(x2d, w1, b1, w2, b2, *, compute_dtype=jnp.bfloat16,
               tile_m=None, tile_h=None, vmem_limit_bytes=None):
    """x2d: (M, IN). w1: (IN, HID), b1: (HID,), w2: (HID, OUT), b2: (OUT,).
    Returns (M, OUT) in x2d.dtype.  compute_dtype controls the MXU input dtype
    (default bf16; accumulation, biases and GELU always stay f32)."""
    M, IN = x2d.shape
    IN_w, HID = w1.shape
    HID_w, OUT = w2.shape
    assert IN_w == IN and HID_w == HID
    out_dtype = x2d.dtype
    if compute_dtype is None:
        compute_dtype = out_dtype
    cdtype = jnp.dtype(compute_dtype)
    cb = cdtype.itemsize
    ob = jnp.dtype(out_dtype).itemsize
    use_acc_scratch = jnp.dtype(out_dtype) != jnp.float32

    # --- generation-aware VMEM budget ---
    vmem_cap = _vmem_capacity_bytes()
    if vmem_limit_bytes is None:
        vmem_limit_bytes = 100 * _MIB if vmem_cap >= 128 * _MIB else 48 * _MIB
    budget = int(vmem_limit_bytes * 0.85)

    # --- lane-dim padding: 128-aligned K/N => unmasked MXU loads, lane-dense stores ---
    INp = _round_up(IN, 128)
    OUTp = _round_up(OUT, 128)
    HID128 = _round_up(HID, 128)

    # --- tile selection (256-aligned targets for the 2x256x256 MXUs on v6e/v7x) ---
    if tile_m is not None:
        tm_target = max(16, _round_up(int(tile_m), 16))
    else:
        tm_target = 1024 if vmem_cap >= 128 * _MIB else 512
    th = min(_round_up(int(tile_h) if tile_h is not None else 512, 128), HID128)

    tm = _round_up(M, 16) if M <= tm_target else tm_target
    # megacore (v7x 2 TCs): make sure there are >= 2 row tiles when M is big enough.
    if M > 256 and _round_up(M, tm) // tm < 2:
        tm = max(256, _round_up((M + 1) // 2, 16))

    def _usage(tm_, th_, wbuf):
        return (2 * tm_ * INp * cb                       # x tile (double buffered)
                + wbuf * INp * th_ * cb                  # w1 tile stream
                + wbuf * th_ * OUTp * cb                 # w2 tile stream
                + 2 * tm_ * OUTp * ob                    # output tile
                + (tm_ * OUTp * 4 if use_acc_scratch else 0)
                + 2 * th_ * 4 + 2 * OUTp * 4)            # biases

    # Shrink hidden tile first, then row tile, until the working set fits.
    while _usage(tm, th, 2) > budget and th > 128:
        th = max(128, _round_up(th // 2, 128))
    while _usage(tm, th, 2) > budget and tm > 16:
        tm = max(16, _round_up(tm // 2, 16))

    Mp = _round_up(M, tm)
    HIDp = _round_up(HID, th)
    n_h_steps = HIDp // th

    # Triple-buffer the streamed weight tiles when there is headroom + enough steps.
    wbuf = 3 if (n_h_steps >= 4 and _usage(tm, th, 3) <= budget) else 2
    w_spec_kwargs = {"pipeline_mode": pl.Buffered(wbuf)} if wbuf != 2 else {}

    # --- zero-pad so every block is full (sliced off after the call) ---
    b1 = jnp.asarray(b1).reshape(1, HID).astype(jnp.float32)
    b2 = jnp.asarray(b2).reshape(1, OUT).astype(jnp.float32)
    if Mp != M or INp != IN:
        x2d = jnp.pad(x2d, ((0, Mp - M), (0, INp - IN)))
    if INp != IN or HIDp != HID:
        w1 = jnp.pad(w1, ((0, INp - IN), (0, HIDp - HID)))
    if HIDp != HID:
        b1 = jnp.pad(b1, ((0, 0), (0, HIDp - HID)))
    if HIDp != HID or OUTp != OUT:
        w2 = jnp.pad(w2, ((0, HIDp - HID), (0, OUTp - OUT)))
    if OUTp != OUT:
        b2 = jnp.pad(b2, ((0, 0), (0, OUTp - OUT)))

    x2d = x2d.astype(cdtype)
    w1 = w1.astype(cdtype)
    w2 = w2.astype(cdtype)
    # TODO(synk): optional fp8 (v7x) / int8 (v6e) weight path with per-tile scales.

    grid = (Mp // tm, n_h_steps)
    scratch_shapes = [pltpu.VMEM((tm, OUTp), jnp.float32)] if use_acc_scratch else []

    out_padded = pl.pallas_call(
        mlp_kernel,
        out_shape=jax.ShapeDtypeStruct((Mp, OUTp), out_dtype),
        grid_spec=pltpu.PrefetchScalarGridSpec(
            num_scalar_prefetch=0,
            grid=grid,
            in_specs=[
                pl.BlockSpec((tm, INp), lambda i, j: (i, 0)),                    # x row tile
                pl.BlockSpec((INp, th), lambda i, j: (0, j), **w_spec_kwargs),   # w1 hidden tile
                pl.BlockSpec((1, th), lambda i, j: (0, j)),                      # b1 hidden tile
                pl.BlockSpec((th, OUTp), lambda i, j: (j, 0), **w_spec_kwargs),  # w2 hidden tile
                pl.BlockSpec((1, OUTp), lambda i, j: (0, 0)),                    # b2 (resident)
            ],
            out_specs=pl.BlockSpec((tm, OUTp), lambda i, j: (i, 0)),
            scratch_shapes=scratch_shapes,
        ),
        compiler_params=pltpu.CompilerParams(
            dimension_semantics=("parallel", "arbitrary"),
            vmem_limit_bytes=int(vmem_limit_bytes),
        ),
    )(x2d, w1, b1, w2, b2)

    return out_padded[:M, :OUT]


def mlp_reference(x, w1, b1, w2, b2):
    h = x @ w1 + b1.reshape(1, -1)
    h = 0.5 * h * (1.0 + jax.lax.erf(h / jnp.sqrt(2.0)))
    return h @ w2 + b2.reshape(1, -1)


if __name__ == "__main__":
    batch, seq = 2, 8
    in_features, hidden_features, out_features = 32, 256, 32

    key = jax.random.PRNGKey(0)
    kx, k1, kb1, k2, kb2 = jax.random.split(key, 5)

    x = jax.random.normal(kx, (batch, seq, in_features), dtype=jnp.float32)

    # PyTorch-Linear-like init: U(-1/sqrt(fan_in), 1/sqrt(fan_in)); weights stored
    # transposed relative to PyTorch ((in, hidden) / (hidden, out)) so rows do x @ W.
    bound1 = 1.0 / math.sqrt(in_features)
    w1 = jax.random.uniform(k1, (in_features, hidden_features),
                            minval=-bound1, maxval=bound1, dtype=jnp.float32)
    b1 = jax.random.uniform(kb1, (hidden_features,),
                            minval=-bound1, maxval=bound1, dtype=jnp.float32)
    bound2 = 1.0 / math.sqrt(hidden_features)
    w2 = jax.random.uniform(k2, (hidden_features, out_features),
                            minval=-bound2, maxval=bound2, dtype=jnp.float32)
    b2 = jax.random.uniform(kb2, (out_features,),
                            minval=-bound2, maxval=bound2, dtype=jnp.float32)

    x2d = x.reshape(-1, in_features)
    ref2d = mlp_reference(x2d, w1, b1, w2, b2)

    # 1) exact f32 path (matches nn.Linear / default nn.GELU numerics).
    out_f32 = mlp_pallas(x2d, w1, b1, w2, b2, compute_dtype=jnp.float32, tile_h=128)
    jax.block_until_ready(out_f32)
    assert out_f32.shape == (batch * seq, out_features)
    assert jnp.allclose(out_f32, ref2d, atol=1e-5, rtol=1e-5), "f32 path mismatch"

    # 2) default fast path: bf16 MXU inputs, f32 accumulation / GELU / f32 output.
    out_fast = mlp_pallas(x2d, w1, b1, w2, b2, tile_h=128)
    jax.block_until_ready(out_fast)
    assert jnp.allclose(out_fast, ref2d, atol=5e-2, rtol=5e-2), "bf16-compute path mismatch"

    # 3) bf16 activations end-to-end (exercises the f32 acc-scratch branch).
    out_bf16 = mlp_pallas(x2d.astype(jnp.bfloat16), w1, b1, w2, b2, tile_h=128)
    jax.block_until_ready(out_bf16)
    assert out_bf16.dtype == jnp.bfloat16
    assert jnp.allclose(out_bf16.astype(jnp.float32), ref2d, atol=1e-1, rtol=1e-1), \
        "bf16-output path mismatch"

    out = out_fast.reshape(batch, seq, out_features)
    assert out.shape == (batch, seq, out_features)
    print("KERNEL_OK")
</pallas_src>

<mosaic_0001>
module attributes {stable_mosaic.version = 11 : i64} {
  func.func @mlp_kernel(%arg0: i32, %arg1: i32, %arg2: memref<16x128xf32, #tpu.memory_space<vmem>>, %arg3: memref<128x128xf32, #tpu.memory_space<vmem>>, %arg4: memref<1x128xf32, #tpu.memory_space<vmem>>, %arg5: memref<128x128xf32, #tpu.memory_space<vmem>>, %arg6: memref<1x128xf32, #tpu.memory_space<vmem>>, %arg7: memref<16x128xf32, #tpu.memory_space<vmem>>) attributes {dimension_semantics = [#tpu.dimension_semantics<parallel>, #tpu.dimension_semantics<arbitrary>], iteration_bounds = array<i64: 1, 2>, scalar_prefetch = 0 : i64, scratch_operands = 0 : i64, tpu.core_type = #tpu.core_type<tc>, window_params = [{transform_indices = @transform_0, window_bounds = array<i64: 16, 128>}, {transform_indices = @transform_1, window_bounds = array<i64: 128, 128>}, {transform_indices = @transform_2, window_bounds = array<i64: 1, 128>}, {transform_indices = @transform_3, window_bounds = array<i64: 128, 128>}, {pipeline_mode = #tpu.pipeline_mode<synchronous>, transform_indices = @transform_4, window_bounds = array<i64: 1, 128>}, {transform_indices = @transform_5, window_bounds = array<i64: 16, 128>}]} {
    %c0_i32 = arith.constant 0 : i32
    %0 = arith.cmpi eq, %arg1, %c0_i32 : i32
    %1 = arith.extui %0 : i1 to i32
    %c0_i32_0 = arith.constant 0 : i32
    %2 = arith.cmpi ne, %1, %c0_i32_0 : i32
    scf.if %2 {
      %cst_17 = arith.constant 0.000000e+00 : f32
      %25 = vector.broadcast %cst_17 : f32 to vector<16x128xf32>
      %c0_18 = arith.constant 0 : index
      %c0_19 = arith.constant 0 : index
      %26 = vector.load %arg7[%c0_18, %c0_19] : memref<16x128xf32, #tpu.memory_space<vmem>>, vector<16x128xf32>
      tpu.vector_store %arg7[%c0_18, %c0_19], %25 {strides = array<i32>} : memref<16x128xf32, #tpu.memory_space<vmem>>, vector<16x128xf32>,
    } else {
    }
    %c0 = arith.constant 0 : index
    %c0_1 = arith.constant 0 : index
    %3 = vector.load %arg2[%c0, %c0_1] : memref<16x128xf32, #tpu.memory_space<vmem>>, vector<16x128xf32>
    %c0_2 = arith.constant 0 : index
    %c0_3 = arith.constant 0 : index
    %4 = vector.load %arg3[%c0_2, %c0_3] : memref<128x128xf32, #tpu.memory_space<vmem>>, vector<128x128xf32>
    %cst = arith.constant dense<0.000000e+00> : vector<16x128xf32>
    %5 = tpu.matmul %3, %4, %cst {dimension_numbers = #tpu.dot_dimension_numbers<[1], [0], [0], [1], [0, 0, 1, 1], [], []>} : vector<16x128xf32>, vector<128x128xf32>, vector<16x128xf32> -> vector<16x128xf32>
    %c0_4 = arith.constant 0 : index
    %c0_5 = arith.constant 0 : index
    %6 = vector.load %arg4[%c0_4, %c0_5] : memref<1x128xf32, #tpu.memory_space<vmem>>, vector<1x128xf32>
    %7 = vector.broadcast %6 : vector<1x128xf32> to vector<16x128xf32>
    %8 = arith.addf %5, %7 : vector<16x128xf32>
    %cst_6 = arith.constant 5.000000e-01 : f32
    %9 = vector.broadcast %cst_6 : f32 to vector<16x128xf32>
    %10 = arith.mulf %9, %8 : vector<16x128xf32>
    %cst_7 = arith.constant 0.707106769 : f32
    %11 = vector.broadcast %cst_7 : f32 to vector<16x128xf32>
    %12 = arith.mulf %8, %11 : vector<16x128xf32>
    %13 = math.erf %12 : vector<16x128xf32>
    %cst_8 = arith.constant 1.000000e+00 : f32
    %14 = vector.broadcast %cst_8 : f32 to vector<16x128xf32>
    %15 = arith.addf %14, %13 : vector<16x128xf32>
    %16 = arith.mulf %10, %15 : vector<16x128xf32>
    %c0_9 = arith.constant 0 : index
    %c0_10 = arith.constant 0 : index
    %17 = vector.load %arg7[%c0_9, %c0_10] : memref<16x128xf32, #tpu.memory_space<vmem>>, vector<16x128xf32>
    %c0_11 = arith.constant 0 : index
    %c0_12 = arith.constant 0 : index
    %18 = vector.load %arg5[%c0_11, %c0_12] : memref<128x128xf32, #tpu.memory_space<vmem>>, vector<128x128xf32>
    %cst_13 = arith.constant dense<0.000000e+00> : vector<16x128xf32>
    %19 = tpu.matmul %16, %18, %cst_13 {dimension_numbers = #tpu.dot_dimension_numbers<[1], [0], [0], [1], [0, 0, 1, 1], [], []>} : vector<16x128xf32>, vector<128x128xf32>, vector<16x128xf32> -> vector<16x128xf32>
    %20 = arith.addf %17, %19 : vector<16x128xf32>
    %c0_14 = arith.constant 0 : index
    %c0_15 = arith.constant 0 : index
    %21 = vector.load %arg7[%c0_14, %c0_15] : memref<16x128xf32, #tpu.memory_space<vmem>>, vector<16x128xf32>
    tpu.vector_store %arg7[%c0_14, %c0_15], %20 {strides = array<i32>} : memref<16x128xf32, #tpu.memory_space<vmem>>, vector<16x128xf32>,
    %c1_i32 = arith.constant 1 : i32
    %22 = arith.cmpi eq, %arg1, %c1_i32 : i32
    %23 = arith.extui %22 : i1 to i32
    %c0_i32_16 = arith.constant 0 : i32
    %24 = arith.cmpi ne, %23, %c0_i32_16 : i32
    scf.if %24 {
      %c0_17 = arith.constant 0 : index
      %c0_18 = arith.constant 0 : index
      %25 = vector.load %arg7[%c0_17, %c0_18] : memref<16x128xf32, #tpu.memory_space<vmem>>, vector<16x128xf32>
      %c0_19 = arith.constant 0 : index
      %c0_20 = arith.constant 0 : index
      %26 = vector.load %arg6[%c0_19, %c0_20] : memref<1x128xf32, #tpu.memory_space<vmem>>, vector<1x128xf32>
      %27 = vector.broadcast %26 : vector<1x128xf32> to vector<16x128xf32>
      %28 = arith.addf %25, %27 : vector<16x128xf32>
      %c0_21 = arith.constant 0 : index
      %c0_22 = arith.constant 0 : index
      %29 = vector.load %arg7[%c0_21, %c0_22] : memref<16x128xf32, #tpu.memory_space<vmem>>, vector<16x128xf32>
      tpu.vector_store %arg7[%c0_21, %c0_22], %28 {strides = array<i32>} : memref<16x128xf32, #tpu.memory_space<vmem>>, vector<16x128xf32>,
    } else {
    }
    return
  }
  func.func @transform_0(%arg0: i32, %arg1: i32) -> (i32, i32) {
    %c0_i32 = arith.constant 0 : i32
    %c0_i32_0 = arith.constant 0 : i32
    return %arg0, %c0_i32 : i32, i32
  }
  func.func @transform_1(%arg0: i32, %arg1: i32) -> (i32, i32) {
    %c0_i32 = arith.constant 0 : i32
    %c0_i32_0 = arith.constant 0 : i32
    return %c0_i32, %arg1 : i32, i32
  }
  func.func @transform_2(%arg0: i32, %arg1: i32) -> (i32, i32) {
    %c0_i32 = arith.constant 0 : i32
    %c0_i32_0 = arith.constant 0 : i32
    return %c0_i32, %arg1 : i32, i32
  }
  func.func @transform_3(%arg0: i32, %arg1: i32) -> (i32, i32) {
    %c0_i32 = arith.constant 0 : i32
    %c0_i32_0 = arith.constant 0 : i32
    return %arg1, %c0_i32 : i32, i32
  }
  func.func @transform_4(%arg0: i32, %arg1: i32) -> (i32, i32) {
    %c0_i32 = arith.constant 0 : i32
    %c0_i32_0 = arith.constant 0 : i32
    %c0_i32_1 = arith.constant 0 : i32
    return %c0_i32, %c0_i32_0 : i32, i32
  }
  func.func @transform_5(%arg0: i32, %arg1: i32) -> (i32, i32) {
    %c0_i32 = arith.constant 0 : i32
    %c0_i32_0 = arith.constant 0 : i32
    return %arg0, %c0_i32 : i32, i32
  }
}

</mosaic_0001>

<bundles_post_ra>
// kernel: tpu_custom_call.1
= control target key start
LH: loop header
LB: loop body
LE: loop exit
PB: predicated region body
PF: predicated region fallthrough
CT: control target
= control target key end

     0   :  { %10 = vsyncpa [#allocation3], 0  ;;  %s1455_s0 = inlined_call_operand.hbm [shape: f32[16,128], index: 0, kind: input, shape index: {}]   ;;  %s1456_s1 = inlined_call_operand.hbm [shape: f32[128,256], index: 1, kind: input, shape index: {}]   ;;  %s1457_s2 = inlined_call_operand.vmem [shape: f32[1,256], index: 2, kind: input, shape index: {}]   ;;  %s1458_s3 = inlined_call_operand.hbm [shape: f32[256,128], index: 3, kind: input, shape index: {}]   ;;  %s1459_s4 = inlined_call_operand.vmem [shape: f32[1,128], index: 4, kind: input, shape index: {}]   ;;  %s1460_s5 = inlined_call_operand.hbm [shape: f32[16,128], index: 5, kind: output, shape index: {}]  }
   0x1   :  { %11 = vsyncpa [#allocation6], 0 }
   0x2   :  { %13 = vsyncpa [#allocation6 + $0x1], 0 }
   0x3   :  { %14 = vsyncpa [#allocation4], 0  ;;  %s1164_s18 = smov 0   ;;  %s1166_s19 = smov 0  }
   0x4   :  { %s1168_s20 = smov 0   ;;  %s1170_s21 = smov 0  }
   0x5   :  { %s1172_s22 = smov 0   ;;  %s1174_s23 = smov 0  }
   0x6 LB: > { %s29_s24 = sadd.s32 1, %s1118_s22  ;;  %s65_s25 = sadd.s32 1, %s1110_s20  ;;  %s1122_s23 = sphi %s1174_s23, %s20_s23   ;;  %s1118_s22 = sphi %s1172_s22, %s1477_s22   ;;  %s1114_s21 = sphi %s1170_s21, %s1476_s21   ;;  %s1110_s20 = sphi %s1168_s20, %s1475_s20   ;;  %s1106_s19 = sphi %s1166_s19, %s1474_s19   ;;  %s1102_s18 = sphi %s1164_s18, %s1473_s18  }
   0x7   : > { %p30_p0 = scmp.ge.s32.totalorder %s29_s24, 2  ;;  %p72_p1 = scmp.ne.s32.totalorder %s1110_s20, %s1106_s19 }
   0x8   : > { %p73_p2 = scmp.eq.s32.totalorder %s1122_s23, 0  ;;  %p886_p5 = scmp.lt.s32.totalorder %s1122_s23, 2 }
   0x9   : > { %s1479_s24 = smov (%p30_p0, %s29_s24), 0  ;;  %s220_s28 = sand.u32 1, %s1122_s23  }
   0xa   : > { %p1201_p3 = por %p73_p2, %p72_p1  ;;  %s62_s27 = ssub.s32 %s1118_s22, %s1479_s24 }
   0xb   : > { %p63_p4 = scmp.eq.s32.totalorder %s62_s27, 0  ;;  %s222_s29 = sand.u32 1, %s1110_s20  }
   0xc   : > { %s1213_s6 = sshll.u32 %s222_s29, 7  ;;  %s675_s7 = sshll.u32 %s1118_s22, 7 }
   0xd   : > { %s1211_s30 = scalar_select %p63_p4, %s1110_s20, %s65_s25  }
   0xe   : > { %s1219_s10 = scalar_lea.hbm %s1456_s1, %s675_s7  ;;  %s224_s11 = scalar_lea.vmem [#allocation5], %s1213_s6 }
   0xf   : > { %s230_s12 = sshll.u32 %s224_s11, 4  ;;  %p1226_p6 = pnand %p886_p5, %p1201_p3  ;;  %s1222_s12 = int_to_ptr.vmem [resolvable:$true] %s230_s12 }
  0x10   : > { %s1230_s14 = scalar_lea.sflag [#allocation6], %s220_s28  ;;  %s950_s15 = scalar_lea.hbm %s1219_s10, 2048 }
  0x11   : > { %p951_p7 = scmp.ne.s32.totalorder %s1219_s10, %s950_s15  ;;  %p952_p8 = pneg %p1226_p6 }
  0x12   : > { %s955_s25 = scalar_lea.hbm %s1456_s1, 4096  ;;  %p956_p11 = scmp.lt.u32.totalorder %s1219_s10, %s1456_s1 }
  0x13   : > { %p953_p9 = pnand %p952_p8, %p951_p7  ;;  %p957_p12 = scmp.lt.u32.totalorder %s955_s25, %s950_s15 }
  0x14   : > { %p959_p0 = scmp.lt.u32.totalorder %s950_s15, %s1219_s10 }
  0x15   : > { %p954_p10 = pneg %p953_p9  ;;  %p958_p13 = por %p957_p12, %p956_p11 }
  0x17   : > { %p960_p1 = por %p959_p0, %p958_p13 }
  0x19   : > { %p961_p2 = pnand %p960_p1, %p954_p10 }
  0x1b   : > { %964 = shalt.err (!%p961_p2)
}
  0x1c   : > { %s965_s28 = scalar_lea.vmem %s1222_s12, 2048  ;;  %s1124_s29 = smov [#allocation5]  }
  0x1d   : > { %p966_p3 = scmp.ne.s32.totalorder %s1222_s12, %s965_s28  ;;  %s970_s7 = sshll.u32 %s1124_s29, 4  ;;  %s971_s7 = int_to_ptr.vmem [resolvable:$false] %s970_s7 }
  0x1e   : > { %s972_s8 = scalar_lea.vmem %s971_s7, 4096  ;;  %p973_p7 = scmp.lt.s32.totalorder %s1222_s12, %s971_s7 }
  0x1f   : > { %p968_p4 = pnand %p966_p3, %p952_p8  ;;  %p974_p9 = scmp.lt.s32.totalorder %s972_s8, %s965_s28 }
  0x21   : > { %p969_p5 = pneg %p968_p4  ;;  %p975_p11 = por %p974_p9, %p973_p7 }
  0x23   : > { %p976_p12 = pnand %p975_p11, %p969_p5 }
  0x25   : > { %979 = shalt.err (!%p976_p12)
}
  0x26   : > { %s1125_s9 = smov 256   ;;  %s1126_s11 = smov 128  }
  0x27   : > { %s1127_s15 = smov 8   ;;  %s1261_s16 = sadd.s32 4294967295, %s1122_s23  }
  0x28   : > { %881 = dma.hbm_to_vmem [thread:$0]  (!%p1226_p6), %s1219_s10, 2048, %s1222_s12, %s1230_s14, %s1125_s9, %s1126_s11, %s1127_s15  }
  0x29   : > { %p78_p10 = scmp.ne.s32.totalorder %s1106_s19, %s1102_s18  ;;  %p1461_p13 = scmp.eq.s32.totalorder %s1261_s16, 0 }
  0x2a   : > { %p671_p0 = scmp.ge.s32.totalorder %s1122_s23, 1  ;;  %p188_p1 = scmp.lt.s32.totalorder %s1122_s23, 3 }
  0x2b   : > { %p1270_p2 = por %p1461_p13, %p78_p10  ;;  %s1128_s10 = smov [#allocation2]  }
  0x2c   : > { %p1274_p3 = pnand %p671_p0, %p188_p1  ;;  %s203_s12 = sshll.u32 %s1128_s10, 4  ;;  %s1278_s12 = int_to_ptr.vmem [resolvable:$true] %s203_s12 }
  0x2d   : > { %s1466_s17 = scalar_select %p1270_p2, 1, 0 }
  0x2e   : > { %s1467_s25 = scalar_select %p1274_p3, 1, 0 }
  0x2f   : > { %p874_p4 = pneg %p1274_p3  ;;  %s691_s18 = sshll.u32 %s1118_s22, 11 }
  0x30   : > { %s1286_s28 = scalar_lea.hbm %s1458_s3, %s691_s18  ;;  %s250_s29 = scalar_lea.vmem [#allocation7], %s1213_s6 }
  0x31   : > { %s257_s7 = sshll.u32 %s250_s29, 4  ;;  %p1291_p5 = pnand %p874_p4, %p1461_p13  ;;  %s1295_s7 = int_to_ptr.vmem [resolvable:$true] %s257_s7 }
  0x32   : > { %s980_s9 = scalar_lea.hbm %s1286_s28, 2048  ;;  %s985_s26 = scalar_lea.hbm %s1458_s3, 4096 }
  0x33   : > { %p981_p7 = scmp.ne.s32.totalorder %s1286_s28, %s980_s9  ;;  %p986_p12 = scmp.lt.u32.totalorder %s1286_s28, %s1458_s3 }
  0x34   : > { %p987_p10 = scmp.lt.u32.totalorder %s985_s26, %s980_s9  ;;  %p989_p1 = scmp.lt.u32.totalorder %s980_s9, %s1286_s28 }
  0x35   : > { %p983_p9 = pnand %p981_p7, %p952_p8 }
  0x36   : > { %p988_p0 = por %p987_p10, %p986_p12 }
  0x37   : > { %p984_p11 = pneg %p983_p9 }
  0x38   : > { %p990_p4 = por %p989_p1, %p988_p0 }
  0x3a   : > { %p991_p13 = pnand %p990_p4, %p984_p11 }
  0x3c   : > { %994 = shalt.err (!%p991_p13)
}
  0x3d   : > { %s995_s29 = scalar_lea.vmem %s1295_s7, 2048  ;;  %s1129_s10 = smov [#allocation7]  }
  0x3e   : > { %p996_p7 = scmp.ne.s32.totalorder %s1295_s7, %s995_s29  ;;  %s1000_s18 = sshll.u32 %s1129_s10, 4  ;;  %s1001_s18 = int_to_ptr.vmem [resolvable:$false] %s1000_s18 }
  0x3f   : > { %s1002_s27 = scalar_lea.vmem %s1001_s18, 4096  ;;  %p1003_p3 = scmp.lt.s32.totalorder %s1295_s7, %s1001_s18 }
  0x40   : > { %p998_p9 = pnand %p996_p7, %p952_p8  ;;  %p1004_p12 = scmp.lt.s32.totalorder %s1002_s27, %s995_s29 }
  0x42   : > { %p999_p2 = pneg %p998_p9  ;;  %p1005_p10 = por %p1004_p12, %p1003_p3 }
  0x44   : > { %p1006_p0 = pnand %p1005_p10, %p999_p2 }
  0x46   : > { %1009 = shalt.err (!%p1006_p0)
}
  0x47   : > { %884 = dma.hbm_to_vmem [thread:$0]  (!%p1226_p6), %s1286_s28, 2048, %s1295_s7, %s1230_s14, %s1126_s11, %s1126_s11, %s1127_s15  }
  0x48   : > { %s1010_s6 = scalar_lea.hbm %s1455_s0, 256  ;;  %p1012_p13 = pneg %p1291_p5 }
  0x49   : > { %p1011_p8 = scmp.ne.s32.totalorder %s1455_s0, %s1010_s6  ;;  %p1017_p11 = scmp.lt.u32.totalorder %s1010_s6, %s1455_s0 }
  0x4b   : > { %p1013_p2 = pnand %p1012_p13, %p1011_p8 }
  0x4d   : > { %p1014_p3 = pneg %p1013_p2 }
  0x4f   : > { %p1019_p1 = pnand %p1017_p11, %p1014_p3 }
  0x51   : > { %1022 = shalt.err (!%p1019_p1)
}
  0x52   : > { %s1023_s14 = scalar_lea.vmem %s1278_s12, 256  ;;  %p1031_p9 = scmp.lt.s32.totalorder %s1278_s12, %s1278_s12 }
  0x53   : > { %p1024_p6 = scmp.ne.s32.totalorder %s1278_s12, %s1023_s14  ;;  %p1032_p12 = scmp.lt.s32.totalorder %s1023_s14, %s1023_s14 }
  0x55   : > { %p1026_p4 = pnand %p1024_p6, %p1012_p13  ;;  %p1033_p10 = por %p1032_p12, %p1031_p9 }
  0x57   : > { %p1027_p7 = pneg %p1026_p4 }
  0x59   : > { %p1034_p0 = pnand %p1033_p10, %p1027_p7 }
  0x5b   : > { %1037 = shalt.err (!%p1034_p0)
}
  0x5c   : > { %877 = dma.hbm_to_vmem [thread:$0]  (!%p1291_p5), %s1455_s0, 256, %s1278_s12, [#allocation3], %s1126_s11, %s1126_s11, %s1127_s15  }
  0x5d   : > { %p1469_p8 = scmp.ne.s32.totalorder %s1467_s25, 0 }
  0x5e   : > { %p1470_p13 = scmp.eq.s32.totalorder (!%p1469_p8), %s1261_s16, 0 }
  0x5f   : > { %269 = sbr.rel (%p1469_p8) target bundleno = 638 (0x27e), region = 40 }
  0x66   : > { %1089 = dma.done.wait (%p1470_p13), [#allocation3], 256   ;;  %p1471_p2 = pmov %p1470_p13 }
  0x67   : > { %s275_s8 = sand.u32 1, %s1261_s16   ;;  %s277_s27 = sand.u32 1, %s1106_s19  }
  0x68   : > { %1091 = vsyncadd (%p1471_p2), [#allocation3], 4294967040  ;;  %s681_s9 = sshll.u32 %s277_s27, 7  ;;  %s276_s26 = scalar_lea.sflag [#allocation6], %s275_s8 }
  0x69   : > { %s1356_s6 = scalar_lea.vmem [#allocation5], %s681_s9  ;;  %p1472_p3 = scmp.ne.s32.totalorder %s1466_s17, 0 }
  0x6b   : > { %1093 = dma.done.wait (%p1472_p3), %s276_s26, 4096  }
  0x6c   : > { %1095 = vsyncadd (%p1472_p3), %s276_s26, 4294963200  ;;  %p319_p5 = scmp.lt.s32.totalorder %s1114_s21, 1  ;;  %s1370_s10 = scalar_lea.vmem [#allocation7], %s681_s9 }
  0x6d   : > { %p683_p11 = scmp.ne.s32.totalorder %s1114_s21, 0 }
  0x6e   : > { %s1364_s11 = scalar_select %p319_p5, %s1114_s21, 1 }
  0x6f   : > { %327 = sbr.rel (%p683_p11) target bundleno = 118 (0x76), region = 56  ;;  %v1130_v0 = vmov (!%p683_p11), 0.0  }
  0x70   : > { %s321_s12 = scalar_lea.vmem %s1457_s2, %s1364_s11  ;;  %328 = vst [vmem:[#allocation8] sm:$0xff] (!%p683_p11), %v1130_v0  ;;  %329 = vst [vmem:[#allocation8 + $0x8] sm:$0xff] (!%p683_p11), %v1130_v0 }
  0x76 PF: > { %v332_v1 = vld [vmem:[%s1356_s6] sm:$0xff]  ;;  %v333_v2 = vld [vmem:[%s1356_s6 + $0x8] sm:$0xff]  ;;  %v334_v3 = vld [vmem:[%s1356_s6 + $0x10] sm:$0xff]  ;;  %p685_p1 = scmp.ne.s32.totalorder %s1114_s21, 1 }
  0x77   : > { %v798_v4 = vpack.c.bf16 %v333_v2, %v332_v1  ;;  %v335_v5 = vld [vmem:[%s1356_s6 + $0x18] sm:$0xff]  ;;  %v336_v7 = vld [vmem:[%s1356_s6 + $0x20] sm:$0xff]  ;;  %v337_v8 = vld [vmem:[%s1356_s6 + $0x28] sm:$0xff] }
  0x78   : > { %v802_v6 = vpack.c.bf16 %v335_v5, %v334_v3  ;;  %v806_v9 = vpack.c.bf16 %v337_v8, %v336_v7  ;;  %v338_v10 = vld [vmem:[%s1356_s6 + $0x30] sm:$0xff]  ;;  %v339_v11 = vld [vmem:[%s1356_s6 + $0x38] sm:$0xff]  ;;  %v442_v13 = vld [vmem:[%s1370_s10] sm:$0xff] }
  0x79   : > { %799 = vmatprep.subr.bf16.mxu0 %v798_v4  ;;  %v330_v12 = vld [vmem:[#allocation2] sm:$0xff]  ;;  %v443_v14 = vld [vmem:[%s1370_s10 + $0x8] sm:$0xff]  ;;  %v445_v17 = vld [vmem:[%s1370_s10 + $0x18] sm:$0xff]  ;;  %v810_v21 = vpack.c.bf16 %v339_v11, %v338_v10 }
  0x7a   : > { %801 = vmatpush3.bf16.msra.mxu0 %v798_v4  ;;  %760 = vmatprep.mubr.f32.mxu0 %v330_v12  ;;  %v444_v15 = vld [vmem:[%s1370_s10 + $0x10] sm:$0xff]  ;;  %v830_v16 = vpack.c.bf16 %v443_v14, %v442_v13  ;;  %v446_v19 = vld [vmem:[%s1370_s10 + $0x20] sm:$0xff]  ;;  %v447_v20 = vld [vmem:[%s1370_s10 + $0x28] sm:$0xff] }
  0x7b   : > { %803 = vmatprep.subr.bf16.mxu0 %v802_v6  ;;  %v834_v18 = vpack.c.bf16 %v445_v17, %v444_v15  ;;  %v340_v22 = vld [vmem:[%s1356_s6 + $0x40] sm:$0xff]  ;;  %v341_v23 = vld [vmem:[%s1356_s6 + $0x48] sm:$0xff]  ;;  %v838_v24 = vpack.c.bf16 %v447_v20, %v446_v19  ;;  %v342_v26 = vld [vmem:[%s1356_s6 + $0x50] sm:$0xff] }
  0x7c   : > { %831 = vmatprep.subr.bf16.mxu1 %v830_v16  ;;  %v814_v25 = vpack.c.bf16 %v341_v23, %v340_v22  ;;  %v343_v27 = vld [vmem:[%s1356_s6 + $0x58] sm:$0xff]  ;;  %v344_v29 = vld [vmem:[%s1356_s6 + $0x60] sm:$0xff]  ;;  %v345_v30 = vld [vmem:[%s1356_s6 + $0x68] sm:$0xff] }
  0x7d   : > { %833 = vmatpush3.bf16.msra.mxu1 %v830_v16  ;;  %v818_v28 = vpack.c.bf16 %v343_v27, %v342_v26  ;;  %v822_v31 = vpack.c.bf16 %v345_v30, %v344_v29  ;;  %v346_v32 = vld [vmem:[%s1356_s6 + $0x70] sm:$0xff]  ;;  %v347_v33 = vld [vmem:[%s1356_s6 + $0x78] sm:$0xff]  ;;  %v450_v39 = vld [vmem:[%s1370_s10 + $0x40] sm:$0xff] }
  0x7e   : > { %805 = vmatpush3.bf16.msra.mxu0 %v802_v6  ;;  %835 = vmatprep.subr.bf16.mxu1 %v834_v18  ;;  %v826_v34 = vpack.c.bf16 %v347_v33, %v346_v32  ;;  %v331_v35 = vld [vmem:[#allocation2 + $0x8] sm:$0xff]  ;;  %v448_v36 = vld [vmem:[%s1370_s10 + $0x30] sm:$0xff]  ;;  %v451_v40 = vld [vmem:[%s1370_s10 + $0x48] sm:$0xff] }
  0x7f   : > { %807 = vmatprep.subr.bf16.mxu0 %v806_v9  ;;  %v449_v37 = vld [vmem:[%s1370_s10 + $0x38] sm:$0xff]  ;;  %v846_v41 = vpack.c.bf16 %v451_v40, %v450_v39  ;;  %v452_v42 = vld [vmem:[%s1370_s10 + $0x50] sm:$0xff]  ;;  %v454_v45 = vld [vmem:[%s1370_s10 + $0x60] sm:$0xff] }
  0x80   : > { %v842_v38 = vpack.c.bf16 %v449_v37, %v448_v36  ;;  %v453_v43 = vld [vmem:[%s1370_s10 + $0x58] sm:$0xff]  ;;  %v455_v46 = vld [vmem:[%s1370_s10 + $0x68] sm:$0xff]  ;;  %v456_v48 = vld [vmem:[%s1370_s10 + $0x70] sm:$0xff] }
  0x81   : > { %837 = vmatpush3.bf16.msra.mxu1 %v834_v18  ;;  %v850_v44 = vpack.c.bf16 %v453_v43, %v452_v42  ;;  %v854_v47 = vpack.c.bf16 %v455_v46, %v454_v45  ;;  %v457_v49 = vld [vmem:[%s1370_s10 + $0x78] sm:$0xff]  ;;  %v684_v51 = vld [vmem:[%s321_s12] ss:$0 sm:$0xff]  ;;  %v441_v2 = vld [vmem:[#allocation8 + $0x8] sm:$0xff] }
  0x82   : > { %809 = vmatpush3.bf16.msra.mxu0 %v806_v9  ;;  %839 = vmatprep.subr.bf16.mxu1 %v838_v24  ;;  %v858_v50 = vpack.c.bf16 %v457_v49, %v456_v48  ;;  %v440_v3 = vld [vmem:[#allocation8] sm:$0xff]  ;;  %v686_v9 = vld [vmem:[%s1459_s4] ss:$0 sm:$0xff] (!%p685_p1) }
  0x83   : > { %811 = vmatprep.subr.bf16.mxu0 %v810_v21 }
  0x85   : > { %841 = vmatpush3.bf16.msra.mxu1 %v838_v24 }
  0x86   : > { %813 = vmatpush3.bf16.msra.mxu0 %v810_v21  ;;  %843 = vmatprep.subr.bf16.mxu1 %v842_v38 }
  0x87   : > { %815 = vmatprep.subr.bf16.mxu0 %v814_v25 }
  0x89   : > { %845 = vmatpush3.bf16.msra.mxu1 %v842_v38 }
  0x8a   : > { %817 = vmatpush3.bf16.msra.mxu0 %v814_v25  ;;  %847 = vmatprep.subr.bf16.mxu1 %v846_v41 }
  0x8b   : > { %819 = vmatprep.subr.bf16.mxu0 %v818_v28 }
  0x8d   : > { %849 = vmatpush3.bf16.msra.mxu1 %v846_v41 }
  0x8e   : > { %821 = vmatpush3.bf16.msra.mxu0 %v818_v28  ;;  %851 = vmatprep.subr.bf16.mxu1 %v850_v44 }
  0x8f   : > { %823 = vmatprep.subr.bf16.mxu0 %v822_v31 }
  0x91   : > { %853 = vmatpush3.bf16.msra.mxu1 %v850_v44 }
  0x92   : > { %825 = vmatpush3.bf16.msra.mxu0 %v822_v31  ;;  %855 = vmatprep.subr.bf16.mxu1 %v854_v47 }
  0x93   : > { %827 = vmatprep.subr.bf16.mxu0 %v826_v34 }
  0x95   : > { %857 = vmatpush3.bf16.msra.mxu1 %v854_v47 }
  0x96   : > { %829 = vmatpush3.bf16.msra.mxu0 %v826_v34  ;;  %859 = vmatprep.subr.bf16.mxu1 %v858_v50 }
  0x99   : > { %761 = vmatmul.mubr.f32.vlgmr.msra.gmra.mrb[0].mxu0 %v331_v35  ;;  %861 = vmatpush3.bf16.msra.mxu1 %v858_v50 }
 0x16c   : > { %v762_v52 = vpop.f32.mrb[0].mxu0 }
 0x16d   : > { %v427_v53 = vadd.f32 %v762_v52, %v684_v51  ;;  %v421_v54 = vpop.f32.mrb[1].mxu0 }
 0x16e   : > { %v422_v55 = vadd.f32 %v684_v51, %v421_v54 }
 0x16f   : > { %v433_v56 = vmul.f32 0.70710677, %v427_v53  ;;  %v431_v63 = vmul.f32 0.5, %v427_v53 }
 0x170   : > { %v432_v57 = vmul.f32 0.70710677, %v422_v55  ;;  %v430_v61 = vmul.f32 0.5, %v422_v55 }
 0x171   : > { %946 = verf.f32 %v433_v56 }
 0x172   : > { %948 = verf.f32 %v432_v57 }
 0x17b   : > { %v947_v58 = vpop.eup %946 }
 0x17c   : > { %v949_v59 = vpop.eup %948  ;;  %v437_v60 = vadd.f32 1.0, %v947_v58 }
 0x17d   : > { %v436_v62 = vadd.f32 1.0, %v949_v59 }
 0x17e   : > { %v439_v1 = vmul.f32 %v437_v60, %v431_v63 }
 0x17f   : > { %v438_v0 = vmul.f32 %v436_v62, %v430_v61 }
 0x181   : > { %795 = vmatprep.mubr.f32.mxu1 %v438_v0 }
 0x182   : > { %796 = vmatmul.mubr.f32.vlgmr.msra.gmra.mrb[0].mxu1 %v439_v1 }
 0x253   : > { %540 = sbr.rel (%p685_p1) target bundleno = 612 (0x264), region = 60 }
 0x255   : > { %v797_v4 = vpop.f32.mrb[0].mxu1 }
 0x256   : > { %v534_v5 = vadd.f32 %v797_v4, %v441_v2  ;;  %v524_v6 = vpop.f32.mrb[1].mxu1 }
 0x257   : > { %v533_v7 = vadd.f32 %v524_v6, %v440_v3 }
 0x258   : > { %536 = vst [vmem:[#allocation8 + $0x8] sm:$0xff] %v534_v5 }
 0x259   : > { %535 = vst [vmem:[#allocation8] sm:$0xff] %v533_v7 }
 0x25f   : > { %v542_v10 = vld [vmem:[#allocation8 + $0x8] sm:$0xff] }
 0x260   : > { %v541_v8 = vld [vmem:[#allocation8] sm:$0xff]  ;;  %v551_v12 = vadd.f32 %v686_v9, %v542_v10 }
 0x261   : > { %v550_v11 = vadd.f32 %v686_v9, %v541_v8 }
 0x262   : > { %553 = vst [vmem:[#allocation8 + $0x8] sm:$0xff] %v551_v12 }
 0x263   : > { %552 = vst [vmem:[#allocation8] sm:$0xff] %v550_v11 }
 0x264 PF: > { %p888_p6 = scmp.eq.s32.totalorder %s1261_s16, 1  ;;  %s1131_s14 = smov [#allocation8]  }
 0x265   : > { %s563_s28 = sshll.u32 %s1131_s14, 4  ;;  %s564_s28 = int_to_ptr.vmem [resolvable:$true] %s563_s28 }
 0x266   : > { %s1038_s7 = scalar_lea.vmem %s564_s28, 256  ;;  %p1045_p12 = scmp.lt.s32.totalorder %s564_s28, %s564_s28 }
 0x267   : > { %p1039_p4 = scmp.ne.s32.totalorder %s564_s28, %s1038_s7  ;;  %p1046_p10 = scmp.lt.s32.totalorder %s1038_s7, %s1038_s7 }
 0x269   : > { %p1040_p7 = pnand %p1039_p4, %p888_p6  ;;  %p1047_p0 = por %p1046_p10, %p1045_p12 }
 0x26b   : > { %p1041_p9 = pneg %p1040_p7 }
 0x26d   : > { %p1048_p8 = pnand %p1047_p0, %p1041_p9 }
 0x26f   : > { %1051 = shalt.err (!%p1048_p8)
}
 0x270   : > { %s1052_s27 = scalar_lea.hbm %s1460_s5, 256 }
 0x271   : > { %p1053_p13 = scmp.ne.s32.totalorder %s1460_s5, %s1052_s27  ;;  %p1058_p5 = scmp.lt.u32.totalorder %s1052_s27, %s1460_s5 }
 0x273   : > { %p1054_p2 = pnand %p1053_p13, %p888_p6 }
 0x275   : > { %p1055_p3 = pneg %p1054_p2 }
 0x277   : > { %p1060_p11 = pnand %p1058_p5, %p1055_p3 }
 0x279   : > { %1063 = shalt.err (!%p1060_p11)
}
 0x27a   : > { %s1132_s15 = smov 128   ;;  %s1133_s25 = smov 8  }
 0x27b   : > { %871 = dma.vmem_to_hbm [thread:$0]  (%p888_p6), %s564_s28, 256, %s1460_s5, [#allocation4], %s1132_s15, %s1132_s15, %s1133_s25  }
 0x27c   : > { %1097 = dma.done.wait (%p888_p6), [#allocation4], 256  }
 0x27d   : > { %1099 = vsyncadd (%p888_p6), [#allocation4], 4294967040 }
 0x27e PF: > { %s20_s23 = sadd.s32 1, %s1122_s23   ;;  %s1473_s18 = smov %s1106_s19 }
 0x27f   : > { %p17_p1 = scmp.ge.s32.totalorder %s20_s23, 4   ;;  %s1474_s19 = smov %s1110_s20 }
 0x280   : > { %s1475_s20 = smov %s1211_s30  ;;  %s1476_s21 = smov %s1118_s22 }
 0x281   : > { %s1477_s22 = smov %s1479_s24  ;;  %19 = sbr.rel (!%p17_p1) target bundleno = 6 (0x6), region = 106 }
 0x288   :  { %579 = vsyncpa [#allocation3], 1 }
 0x289   :  { %581 = vsyncpa [#allocation3 + $0x1], 1 }
 0x28a   :  { %582 = vsyncpa [#allocation6], 1 }
 0x28b   :  { %584 = vsyncpa [#allocation6 + $0x1], 1 }
 0x28c   :  { %585 = vsyncpa [#allocation4], 1 }
 0x28d   :  { %587 = vsyncpa [#allocation4 + $0x1], 1 }

</bundles_post_ra>
